<compile_context>
chip_gen: v5e
topology: v5e:2x2
jax: 0.10.0
libtpu: 0.0.40
codegen_flags: <defaults>
</compile_context>

<pallas_src>
import jax
import jax.numpy as jnp
from jax.experimental import pallas as pl
from jax.experimental.pallas import tpu as pltpu


def _round_up(x, m):
    return ((x + m - 1) // m) * m


def kanji_ffnn_kernel(x_ref, w1_ref, b1_ref, w2_ref, b2_ref, o_ref):
    # hidden = x @ W1^T + b1   (weights stored pre-transposed: [E_pad, H_pad])
    h = jnp.dot(x_ref[...], w1_ref[...],
                preferred_element_type=jnp.float32) + b1_ref[...]
    # logits = hidden @ W2^T + b2  ([H_pad, R_pad]); cast h to the weight dtype
    # so the bf16 path stays a native bf16 MXU matmul (f32 accumulation).
    logits = jnp.dot(h.astype(w2_ref.dtype), w2_ref[...],
                     preferred_element_type=jnp.float32) + b2_ref[...]
    # sigmoid: exp lands on the EUP; reciprocal via pl.reciprocal.
    # (approx=True would move the recip fully onto the EUP at ~1e-3 accuracy.)
    o_ref[...] = pl.reciprocal(1.0 + jnp.exp(-logits),
                               approx=False).astype(o_ref.dtype)


def kanji_ffnn_forward(x, w1, b1, w2, b2, *, compute_dtype=jnp.float32,
                       batch_block=256):
    """KanjiFFNN forward.

    x  : [B, E]          input
    w1 : [H, E], b1: [H] PyTorch nn.Linear(E, H) parameters
    w2 : [R, H], b2: [R] PyTorch nn.Linear(H, R) parameters
    returns sigmoid((x @ w1.T + b1) @ w2.T + b2) -> [B, R] float32
    """
    B, E = x.shape
    H = w1.shape[0]
    R = w2.shape[0]

    # TPU-friendly padded sizes (zero padding is numerically inert).
    E_pad = _round_up(E, 128)   # lane-dense contraction dim of 1st matmul
    H_pad = _round_up(H, 128)   # 300 -> 384: full-vreg hidden activations
    R_pad = _round_up(R, 128)   # lane-dense output -> unmasked vector stores

    use_grid = B > batch_block
    if use_grid:
        B_pad = _round_up(B, batch_block)
    else:
        B_pad = _round_up(max(B, 8), 8)   # f32 sublane granularity

    cdt = compute_dtype
    xp = jnp.pad(x.astype(cdt), ((0, B_pad - B), (0, E_pad - E)))
    w1p = jnp.pad(w1.T.astype(cdt), ((0, E_pad - E), (0, H_pad - H)))  # [E_pad,H_pad]
    b1p = jnp.pad(b1.astype(jnp.float32), (0, H_pad - H)).reshape(1, H_pad)
    w2p = jnp.pad(w2.T.astype(cdt), ((0, H_pad - H), (0, R_pad - R)))  # [H_pad,R_pad]
    b2p = jnp.pad(b2.astype(jnp.float32), (0, R_pad - R)).reshape(1, R_pad)

    out_shape = jax.ShapeDtypeStruct((B_pad, R_pad), jnp.float32)

    if not use_grid:
        # Single invocation, no grid loop: everything resident in VMEM.
        out = pl.pallas_call(
            kanji_ffnn_kernel,
            out_shape=out_shape,
            in_specs=[pl.BlockSpec(memory_space=pltpu.MemorySpace.VMEM)] * 5,
            out_specs=pl.BlockSpec(memory_space=pltpu.MemorySpace.VMEM),
        )(xp, w1p, b1p, w2p, b2p)
    else:
        # Large batch: tile the batch with a "parallel" axis so v7x's two
        # TensorCores split the work; weights are broadcast (constant block).
        nb = B_pad // batch_block
        out = pl.pallas_call(
            kanji_ffnn_kernel,
            out_shape=out_shape,
            grid=(nb,),
            in_specs=[
                pl.BlockSpec((batch_block, E_pad), lambda i: (i, 0)),
                pl.BlockSpec((E_pad, H_pad), lambda i: (0, 0)),
                pl.BlockSpec((1, H_pad), lambda i: (0, 0)),
                pl.BlockSpec((H_pad, R_pad), lambda i: (0, 0)),
                pl.BlockSpec((1, R_pad), lambda i: (0, 0)),
            ],
            out_specs=pl.BlockSpec((batch_block, R_pad), lambda i: (i, 0)),
            compiler_params=pltpu.CompilerParams(
                dimension_semantics=("parallel",)),
        )(xp, w1p, b1p, w2p, b2p)

    return out[:B, :R]


if __name__ == "__main__":
    eng_vocab_size = 32
    radical_vocab_size = 16
    hidden = 300          # hardcoded in KanjiFFNN.__init__
    batch = 2

    key = jax.random.PRNGKey(0)
    k_x, k_w1, k_b1, k_w2, k_b2 = jax.random.split(key, 5)

    bound1 = 1.0 / jnp.sqrt(eng_vocab_size)
    bound2 = 1.0 / jnp.sqrt(hidden)
    # PyTorch nn.Linear layout: weight is [out, in].
    w1 = jax.random.uniform(k_w1, (hidden, eng_vocab_size), jnp.float32,
                            -bound1, bound1)
    b1 = jax.random.uniform(k_b1, (hidden,), jnp.float32, -bound1, bound1)
    w2 = jax.random.uniform(k_w2, (radical_vocab_size, hidden), jnp.float32,
                            -bound2, bound2)
    b2 = jax.random.uniform(k_b2, (radical_vocab_size,), jnp.float32,
                            -bound2, bound2)

    # --- small-batch fp32 path (no grid), strict check vs pure-JAX reference
    x = jax.random.normal(k_x, (batch, eng_vocab_size), jnp.float32)
    ref = jax.nn.sigmoid((x @ w1.T + b1) @ w2.T + b2)

    out = kanji_ffnn_forward(x, w1, b1, w2, b2)
    out = jax.block_until_ready(out)
    assert out.shape == (batch, radical_vocab_size)
    assert jnp.allclose(out, ref, atol=1e-5, rtol=1e-5)

    # --- larger-batch bf16 MXU path with a "parallel" batch grid axis
    big_b = 512
    xb = jax.random.normal(k_x, (big_b, eng_vocab_size), jnp.float32)
    refb = jax.nn.sigmoid((xb @ w1.T + b1) @ w2.T + b2)
    outb = kanji_ffnn_forward(xb, w1, b1, w2, b2,
                              compute_dtype=jnp.bfloat16, batch_block=256)
    outb = jax.block_until_ready(outb)
    assert outb.shape == (big_b, radical_vocab_size)
    assert jnp.allclose(outb, refb, atol=5e-2, rtol=5e-2)

    # TODO(synk): train_fit / train_model are host-side training loops
    # (optimizer, MSELoss, backward) and are intentionally not kernelized.
    print("KERNEL_OK")
</pallas_src>

<mosaic_0001>
module attributes {stable_mosaic.version = 11 : i64} {
  func.func @kanji_ffnn_kernel(%arg0: memref<8x128xf32, #tpu.memory_space<vmem>>, %arg1: memref<128x384xf32, #tpu.memory_space<vmem>>, %arg2: memref<1x384xf32, #tpu.memory_space<vmem>>, %arg3: memref<384x128xf32, #tpu.memory_space<vmem>>, %arg4: memref<1x128xf32, #tpu.memory_space<vmem>>, %arg5: memref<8x128xf32, #tpu.memory_space<vmem>>) attributes {dimension_semantics = [], scalar_prefetch = 0 : i64, scratch_operands = 0 : i64, tpu.core_type = #tpu.core_type<tc>} {
    %c0 = arith.constant 0 : index
    %c0_0 = arith.constant 0 : index
    %0 = vector.load %arg0[%c0, %c0_0] : memref<8x128xf32, #tpu.memory_space<vmem>>, vector<8x128xf32>
    %c0_1 = arith.constant 0 : index
    %c0_2 = arith.constant 0 : index
    %1 = vector.load %arg1[%c0_1, %c0_2] : memref<128x384xf32, #tpu.memory_space<vmem>>, vector<128x384xf32>
    %cst = arith.constant dense<0.000000e+00> : vector<8x384xf32>
    %2 = tpu.matmul %0, %1, %cst {dimension_numbers = #tpu.dot_dimension_numbers<[1], [0], [0], [1], [0, 0, 1, 1], [], []>} : vector<8x128xf32>, vector<128x384xf32>, vector<8x384xf32> -> vector<8x384xf32>
    %c0_3 = arith.constant 0 : index
    %c0_4 = arith.constant 0 : index
    %3 = vector.load %arg2[%c0_3, %c0_4] : memref<1x384xf32, #tpu.memory_space<vmem>>, vector<1x384xf32>
    %4 = vector.broadcast %3 : vector<1x384xf32> to vector<8x384xf32>
    %5 = arith.addf %2, %4 : vector<8x384xf32>
    %c0_5 = arith.constant 0 : index
    %c0_6 = arith.constant 0 : index
    %6 = vector.load %arg3[%c0_5, %c0_6] : memref<384x128xf32, #tpu.memory_space<vmem>>, vector<384x128xf32>
    %cst_7 = arith.constant dense<0.000000e+00> : vector<8x128xf32>
    %7 = tpu.matmul %5, %6, %cst_7 {dimension_numbers = #tpu.dot_dimension_numbers<[1], [0], [0], [1], [0, 0, 1, 1], [], []>} : vector<8x384xf32>, vector<384x128xf32>, vector<8x128xf32> -> vector<8x128xf32>
    %c0_8 = arith.constant 0 : index
    %c0_9 = arith.constant 0 : index
    %8 = vector.load %arg4[%c0_8, %c0_9] : memref<1x128xf32, #tpu.memory_space<vmem>>, vector<1x128xf32>
    %9 = vector.broadcast %8 : vector<1x128xf32> to vector<8x128xf32>
    %10 = arith.addf %7, %9 : vector<8x128xf32>
    %cst_10 = arith.constant 0.000000e+00 : f32
    %11 = vector.broadcast %cst_10 : f32 to vector<8x128xf32>
    %12 = arith.subf %11, %10 : vector<8x128xf32>
    %13 = math.exp %12 : vector<8x128xf32>
    %cst_11 = arith.constant 1.000000e+00 : f32
    %14 = vector.broadcast %cst_11 : f32 to vector<8x128xf32>
    %15 = arith.addf %14, %13 : vector<8x128xf32>
    %16 = tpu.reciprocal %15 : vector<8x128xf32> -> vector<8x128xf32>
    %c0_12 = arith.constant 0 : index
    %c0_13 = arith.constant 0 : index
    %17 = vector.load %arg5[%c0_12, %c0_13] : memref<8x128xf32, #tpu.memory_space<vmem>>, vector<8x128xf32>
    tpu.vector_store %arg5[%c0_12, %c0_13], %16 {strides = array<i32>} : memref<8x128xf32, #tpu.memory_space<vmem>>, vector<8x128xf32>,
    return
  }
}

</mosaic_0001>

<bundles_post_ra>
// kernel: tpu_custom_call.1
= control target key start
LH: loop header
LB: loop body
LE: loop exit
PB: predicated region body
PF: predicated region fallthrough
CT: control target
= control target key end

     0   :  { %10 = vsyncpa [#allocation3], 0  ;;  %s546_s0 = inlined_call_operand.hbm [shape: f32[8,128], index: 0, kind: input, shape index: {}]   ;;  %s547_s1 = inlined_call_operand.hbm [shape: f32[128,384], index: 1, kind: input, shape index: {}]   ;;  %s548_s2 = inlined_call_operand.hbm [shape: f32[1,384], index: 2, kind: input, shape index: {}]   ;;  %s549_s3 = inlined_call_operand.hbm [shape: f32[384,128], index: 3, kind: input, shape index: {}]   ;;  %s550_s4 = inlined_call_operand.vmem [shape: f32[1,128], index: 4, kind: input, shape index: {}]   ;;  %s551_s5 = inlined_call_operand.hbm [shape: f32[8,128], index: 5, kind: output, shape index: {}]  }
   0x1   :  { %11 = vsyncpa [#allocation6], 0 }
   0x2   :  { %12 = vsyncpa [#allocation9], 0  ;;  %s29_s20 = sshll.u32 %s547_s1, 4  ;;  %s30_s20 = int_to_ptr.hbm [resolvable:$true] %s29_s20 }
   0x3   :  { %13 = vsyncpa [#allocation4], 0  ;;  %s489_s21 = smov [#allocation5]   ;;  %s19_s25 = sshll.u32 %s546_s0, 4  ;;  %s20_s25 = int_to_ptr.hbm [resolvable:$true] %s19_s25 }
   0x4   :  { %s31_s22 = sshll.u32 %s489_s21, 4  ;;  %s490_s26 = smov 384   ;;  %s32_s22 = int_to_ptr.vmem [resolvable:$true] %s31_s22 }
   0x5   :  { %s491_s27 = smov 24   ;;  %s492_s28 = smov [#allocation2]  }
   0x6   :  { %37 = dma.hbm_to_vmem [thread:$0]  %s30_s20, 6144, %s32_s22, [#allocation6], %s490_s26, %s490_s26, %s491_s27  }
   0x7   :  { %s21_s29 = sshll.u32 %s492_s28, 4  ;;  %s43_s7 = sshll.u32 %s548_s2, 4  ;;  %s22_s29 = int_to_ptr.vmem [resolvable:$true] %s21_s29  ;;  %s44_s7 = int_to_ptr.hbm [resolvable:$true] %s43_s7 }
   0x8   :  { %24 = dma.hbm_to_vmem [thread:$0]  %s20_s25, 128, %s22_s29, [#allocation3]  }
   0x9   :  { %s53_s9 = sshll.u32 %s549_s3, 4  ;;  %s493_s10 = smov [#allocation7]   ;;  %s54_s9 = int_to_ptr.hbm [resolvable:$true] %s53_s9 }
   0xa   :  { %s45_s11 = sshll.u32 %s493_s10, 4  ;;  %s494_s0 = smov [#allocation8]   ;;  %s46_s11 = int_to_ptr.vmem [resolvable:$true] %s45_s11 }
   0xb   :  { %48 = dma.hbm_to_vmem [thread:$0]  %s44_s7, 48, %s46_s11, [#allocation6]  }
   0xc   :  { %s55_s12 = sshll.u32 %s494_s0, 4  ;;  %s495_s13 = smov 128   ;;  %s56_s12 = int_to_ptr.vmem [resolvable:$true] %s55_s12 }
   0xd   :  { %s496_s14 = smov 8  }
   0xe   :  { %61 = dma.hbm_to_vmem [thread:$0]  %s54_s9, 6144, %s56_s12, [#allocation9], %s495_s13, %s495_s13, %s496_s14  }
   0xf   :  { %481 = dma.done.wait [#allocation3], 128  }
  0x10   :  { %482 = vsyncadd [#allocation3], 4294967168 }
  0x11   :  { %483 = dma.done.wait [#allocation6], 6192  }
  0x12   :  { %484 = vsyncadd [#allocation6], 4294961104 }
  0x13   :  { %485 = dma.done.wait [#allocation9], 6144  }
  0x14   :  { %486 = vsyncadd [#allocation9], 4294961152  ;;  %v126_v0 = vld [vmem:[#allocation5 + $0x168] sm:$0xff]  ;;  %v123_v1 = vld [vmem:[#allocation5 + $0x150] sm:$0xff]  ;;  %s335_s18 = sshll.u32 %s551_s5, 4  ;;  %s336_s18 = int_to_ptr.hbm [resolvable:$true] %s335_s18 }
  0x15   :  { %137 = vmatpush.msra.mxu0 %v126_v0  ;;  %v128_v2 = vld [vmem:[#allocation5 + $0x178] sm:$0xff]  ;;  %v125_v3 = vld [vmem:[#allocation5 + $0x160] sm:$0xff]  ;;  %v127_v5 = vld [vmem:[#allocation5 + $0x170] sm:$0xff] }
  0x16   :  { %v120_v4 = vld [vmem:[#allocation5 + $0x138] sm:$0xff]  ;;  %177 = vmatpush.msra.mxu2 %v128_v2  ;;  %157 = vmatpush.msra.mxu1 %v127_v5  ;;  %v122_v6 = vld [vmem:[#allocation5 + $0x148] sm:$0xff]  ;;  %v117_v8 = vld [vmem:[#allocation5 + $0x120] sm:$0xff] }
  0x17   :  { %138 = vmatpush.msra.mxu0 %v123_v1  ;;  %v124_v7 = vld [vmem:[#allocation5 + $0x158] sm:$0xff]  ;;  %v121_v9 = vld [vmem:[#allocation5 + $0x140] sm:$0xff]  ;;  %v119_v10 = vld [vmem:[#allocation5 + $0x130] sm:$0xff] }
  0x18   :  { %178 = vmatpush.msra.mxu2 %v125_v3  ;;  %158 = vmatpush.msra.mxu1 %v124_v7  ;;  %v114_v11 = vld [vmem:[#allocation5 + $0x108] sm:$0xff]  ;;  %v116_v13 = vld [vmem:[#allocation5 + $0x118] sm:$0xff]  ;;  %v111_v14 = vld [vmem:[#allocation5 + $0xf0] sm:$0xff] }
  0x19   :  { %139 = vmatpush.msra.mxu0 %v120_v4  ;;  %v118_v12 = vld [vmem:[#allocation5 + $0x128] sm:$0xff]  ;;  %v115_v15 = vld [vmem:[#allocation5 + $0x110] sm:$0xff]  ;;  %v113_v16 = vld [vmem:[#allocation5 + $0x100] sm:$0xff] }
  0x1a   :  { %179 = vmatpush.msra.mxu2 %v122_v6  ;;  %159 = vmatpush.msra.mxu1 %v121_v9  ;;  %v108_v17 = vld [vmem:[#allocation5 + $0xd8] sm:$0xff]  ;;  %v110_v19 = vld [vmem:[#allocation5 + $0xe8] sm:$0xff]  ;;  %v105_v20 = vld [vmem:[#allocation5 + $0xc0] sm:$0xff] }
  0x1b   :  { %140 = vmatpush.msra.mxu0 %v117_v8  ;;  %v112_v18 = vld [vmem:[#allocation5 + $0xf8] sm:$0xff]  ;;  %v109_v21 = vld [vmem:[#allocation5 + $0xe0] sm:$0xff]  ;;  %v107_v22 = vld [vmem:[#allocation5 + $0xd0] sm:$0xff] }
  0x1c   :  { %180 = vmatpush.msra.mxu2 %v119_v10  ;;  %160 = vmatpush.msra.mxu1 %v118_v12  ;;  %v102_v23 = vld [vmem:[#allocation5 + $0xa8] sm:$0xff]  ;;  %v104_v25 = vld [vmem:[#allocation5 + $0xb8] sm:$0xff]  ;;  %v99_v26 = vld [vmem:[#allocation5 + $0x90] sm:$0xff] }
  0x1d   :  { %141 = vmatpush.msra.mxu0 %v114_v11  ;;  %v106_v24 = vld [vmem:[#allocation5 + $0xc8] sm:$0xff]  ;;  %v103_v27 = vld [vmem:[#allocation5 + $0xb0] sm:$0xff]  ;;  %v212_v28 = vld [vmem:[#allocation8 + $0x78] sm:$0xff] }
  0x1e   :  { %181 = vmatpush.msra.mxu2 %v116_v13  ;;  %161 = vmatpush.msra.mxu1 %v115_v15  ;;  %v101_v29 = vld [vmem:[#allocation5 + $0xa0] sm:$0xff]  ;;  %v211_v30 = vld [vmem:[#allocation8 + $0x70] sm:$0xff]  ;;  %v98_v33 = vld [vmem:[#allocation5 + $0x88] sm:$0xff] }
  0x1f   :  { %142 = vmatpush.msra.mxu0 %v111_v14  ;;  %v96_v31 = vld [vmem:[#allocation5 + $0x78] sm:$0xff]  ;;  %249 = vmatpush.msra.mxu3 %v212_v28  ;;  %v210_v34 = vld [vmem:[#allocation8 + $0x68] sm:$0xff]  ;;  %v93_v35 = vld [vmem:[#allocation5 + $0x60] sm:$0xff] }
  0x20   :  { %182 = vmatpush.msra.mxu2 %v113_v16  ;;  %162 = vmatpush.msra.mxu1 %v112_v18  ;;  %v100_v32 = vld [vmem:[#allocation5 + $0x98] sm:$0xff]  ;;  %v97_v36 = vld [vmem:[#allocation5 + $0x80] sm:$0xff]  ;;  %v95_v37 = vld [vmem:[#allocation5 + $0x70] sm:$0xff] }
  0x21   :  { %143 = vmatpush.msra.mxu0 %v108_v17  ;;  %250 = vmatpush.msra.mxu3 %v211_v30  ;;  %v209_v38 = vld [vmem:[#allocation8 + $0x60] sm:$0xff]  ;;  %v92_v41 = vld [vmem:[#allocation5 + $0x58] sm:$0xff]  ;;  %v87_v43 = vld [vmem:[#allocation5 + $0x30] sm:$0xff] }
  0x22   :  { %183 = vmatpush.msra.mxu2 %v110_v19  ;;  %163 = vmatpush.msra.mxu1 %v109_v21  ;;  %v90_v39 = vld [vmem:[#allocation5 + $0x48] sm:$0xff]  ;;  %v208_v42 = vld [vmem:[#allocation8 + $0x58] sm:$0xff]  ;;  %v91_v44 = vld [vmem:[#allocation5 + $0x50] sm:$0xff] }
  0x23   :  { %144 = vmatpush.msra.mxu0 %v105_v20  ;;  %v94_v40 = vld [vmem:[#allocation5 + $0x68] sm:$0xff]  ;;  %251 = vmatpush.msra.mxu3 %v210_v34  ;;  %v89_v45 = vld [vmem:[#allocation5 + $0x40] sm:$0xff]  ;;  %v207_v46 = vld [vmem:[#allocation8 + $0x50] sm:$0xff] }
  0x24   :  { %184 = vmatpush.msra.mxu2 %v107_v22  ;;  %164 = vmatpush.msra.mxu1 %v106_v24  ;;  %v84_v47 = vld [vmem:[#allocation5 + $0x18] sm:$0xff]  ;;  %v86_v49 = vld [vmem:[#allocation5 + $0x28] sm:$0xff]  ;;  %v81_v51 = vld [vmem:[#allocation5] sm:$0xff] }
  0x25   :  { %145 = vmatpush.msra.mxu0 %v102_v23  ;;  %252 = vmatpush.msra.mxu3 %v209_v38  ;;  %v88_v48 = vld [vmem:[#allocation5 + $0x38] sm:$0xff]  ;;  %v206_v50 = vld [vmem:[#allocation8 + $0x48] sm:$0xff]  ;;  %v85_v52 = vld [vmem:[#allocation5 + $0x20] sm:$0xff] }
  0x26   :  { %185 = vmatpush.msra.mxu2 %v104_v25  ;;  %165 = vmatpush.msra.mxu1 %v103_v27  ;;  %v80_v53 = vld [vmem:[#allocation2] sm:$0xff]  ;;  %v83_v54 = vld [vmem:[#allocation5 + $0x10] sm:$0xff]  ;;  %v82_v55 = vld [vmem:[#allocation5 + $0x8] sm:$0xff] }
  0x27   :  { %146 = vmatpush.msra.mxu0 %v99_v26  ;;  %253 = vmatpush.msra.mxu3 %v208_v42  ;;  %v228_v56 = vld [vmem:[#allocation8 + $0xf8] sm:$0xff]  ;;  %v205_v58 = vld [vmem:[#allocation8 + $0x40] sm:$0xff]  ;;  %v227_v59 = vld [vmem:[#allocation8 + $0xf0] sm:$0xff] }
  0x28   :  { %186 = vmatpush.msra.mxu2 %v101_v29  ;;  %166 = vmatpush.msra.mxu1 %v100_v32  ;;  %v244_v57 = vld [vmem:[#allocation8 + $0x178] sm:$0xff]  ;;  %v243_v60 = vld [vmem:[#allocation8 + $0x170] sm:$0xff]  ;;  %v226_v62 = vld [vmem:[#allocation8 + $0xe8] sm:$0xff] }
  0x29   :  { %147 = vmatpush.msra.mxu0 %v96_v31  ;;  %254 = vmatpush.msra.mxu3 %v207_v46  ;;  %v204_v61 = vld [vmem:[#allocation8 + $0x38] sm:$0xff]  ;;  %v242_v63 = vld [vmem:[#allocation8 + $0x168] sm:$0xff]  ;;  %v203_v0 = vld [vmem:[#allocation8 + $0x30] sm:$0xff] }
  0x2a   :  { %187 = vmatpush.msra.mxu2 %v98_v33  ;;  %167 = vmatpush.msra.mxu1 %v97_v36  ;;  %v225_v1 = vld [vmem:[#allocation8 + $0xe0] sm:$0xff]  ;;  %v202_v3 = vld [vmem:[#allocation8 + $0x28] sm:$0xff]  ;;  %v224_v4 = vld [vmem:[#allocation8 + $0xd8] sm:$0xff] }
  0x2b   :  { %148 = vmatpush.msra.mxu0 %v93_v35  ;;  %255 = vmatpush.msra.mxu3 %v206_v50  ;;  %v241_v2 = vld [vmem:[#allocation8 + $0x160] sm:$0xff]  ;;  %v240_v5 = vld [vmem:[#allocation8 + $0x158] sm:$0xff]  ;;  %v223_v7 = vld [vmem:[#allocation8 + $0xd0] sm:$0xff] }
  0x2c   :  { %188 = vmatpush.msra.mxu2 %v95_v37  ;;  %168 = vmatpush.msra.mxu1 %v94_v40  ;;  %v201_v6 = vld [vmem:[#allocation8 + $0x20] sm:$0xff]  ;;  %v239_v8 = vld [vmem:[#allocation8 + $0x150] sm:$0xff]  ;;  %v200_v9 = vld [vmem:[#allocation8 + $0x18] sm:$0xff] }
  0x2d   :  { %149 = vmatpush.msra.mxu0 %v90_v39  ;;  %256 = vmatpush.msra.mxu3 %v205_v58  ;;  %v222_v10 = vld [vmem:[#allocation8 + $0xc8] sm:$0xff]  ;;  %v199_v12 = vld [vmem:[#allocation8 + $0x10] sm:$0xff]  ;;  %v221_v13 = vld [vmem:[#allocation8 + $0xc0] sm:$0xff] }
  0x2e   :  { %189 = vmatpush.msra.mxu2 %v92_v41  ;;  %169 = vmatpush.msra.mxu1 %v91_v44  ;;  %v238_v11 = vld [vmem:[#allocation8 + $0x148] sm:$0xff]  ;;  %v237_v14 = vld [vmem:[#allocation8 + $0x140] sm:$0xff]  ;;  %v220_v15 = vld [vmem:[#allocation8 + $0xb8] sm:$0xff] }
  0x2f   :  { %150 = vmatpush.msra.mxu0 %v87_v43  ;;  %257 = vmatpush.msra.mxu3 %v204_v61  ;;  %v236_v16 = vld [vmem:[#allocation8 + $0x138] sm:$0xff]  ;;  %v219_v17 = vld [vmem:[#allocation8 + $0xb0] sm:$0xff]  ;;  %v198_v18 = vld [vmem:[#allocation8 + $0x8] sm:$0xff] }
  0x30   :  { %190 = vmatpush.msra.mxu2 %v89_v45  ;;  %170 = vmatpush.msra.mxu1 %v88_v48  ;;  %v218_v19 = vld [vmem:[#allocation8 + $0xa8] sm:$0xff]  ;;  %v235_v20 = vld [vmem:[#allocation8 + $0x130] sm:$0xff]  ;;  %v197_v21 = vld [vmem:[#allocation8] sm:$0xff] }
  0x31   :  { %151 = vmatpush.msra.mxu0 %v84_v47  ;;  %258 = vmatpush.msra.mxu3 %v203_v0  ;;  %v217_v22 = vld [vmem:[#allocation8 + $0xa0] sm:$0xff]  ;;  %v234_v23 = vld [vmem:[#allocation8 + $0x128] sm:$0xff]  ;;  %v216_v24 = vld [vmem:[#allocation8 + $0x98] sm:$0xff] }
  0x32   :  { %191 = vmatpush.msra.mxu2 %v86_v49  ;;  %171 = vmatpush.msra.mxu1 %v85_v52  ;;  %v233_v25 = vld [vmem:[#allocation8 + $0x120] sm:$0xff]  ;;  %v215_v26 = vld [vmem:[#allocation8 + $0x90] sm:$0xff]  ;;  %v232_v27 = vld [vmem:[#allocation8 + $0x118] sm:$0xff] }
  0x33   :  { %152 = vmatpush.msra.mxu0 %v81_v51  ;;  %259 = vmatpush.msra.mxu3 %v202_v3  ;;  %v214_v28 = vld [vmem:[#allocation8 + $0x88] sm:$0xff]  ;;  %v231_v29 = vld [vmem:[#allocation8 + $0x110] sm:$0xff]  ;;  %v213_v30 = vld [vmem:[#allocation8 + $0x80] sm:$0xff] }
  0x34   :  { %153 = vmatmul.f32.vlgmr.msra.gmra.mxu0 %v80_v53  ;;  %192 = vmatpush.msra.mxu2 %v83_v54  ;;  %v230_v31 = vld [vmem:[#allocation8 + $0x108] sm:$0xff]  ;;  %v229_v32 = vld [vmem:[#allocation8 + $0x100] sm:$0xff]  ;;  %v129_v33 = vld [vmem:[#allocation7] sm:$0x7] }
  0x35   :  { %193 = vmatmul.f32.vlgmr.msra.gmra.mxu2 %v80_v53  ;;  %172 = vmatpush.msra.mxu1 %v82_v55  ;;  %v131_v34 = vperm.slane %v129_v33, 0  ;;  %v132_v35 = vperm.slane %v129_v33, 1  ;;  %v133_v40 = vperm.slane %v129_v33, 2  ;;  %v356_v43 = vld [vmem:[%s550_s4] ss:$0 sm:$0xff]  ;;  %s497_s4 = smov [#allocation10]  }
  0x36   :  { %173 = vmatmul.f32.vlgmr.msra.gmra.mxu1 %v80_v53  ;;  %269 = vmatpush.msrb.mxu0 %v228_v56  ;;  %s333_s15 = sshll.u32 %s497_s4, 4  ;;  %s334_s15 = int_to_ptr.vmem [resolvable:$true] %s333_s15 }
  0x37   :  { %289 = vmatpush.msrb.mxu1 %v244_v57  ;;  %260 = vmatpush.msra.mxu3 %v201_v6 }
  0x38   :  { %270 = vmatpush.msrb.mxu0 %v227_v59 }
  0x39   :  { %290 = vmatpush.msrb.mxu1 %v243_v60  ;;  %261 = vmatpush.msra.mxu3 %v200_v9 }
  0x3a   :  { %271 = vmatpush.msrb.mxu0 %v226_v62 }
  0x3b   :  { %291 = vmatpush.msrb.mxu1 %v242_v63  ;;  %262 = vmatpush.msra.mxu3 %v199_v12 }
  0x3c   :  { %272 = vmatpush.msrb.mxu0 %v225_v1 }
  0x3d   :  { %292 = vmatpush.msrb.mxu1 %v241_v2  ;;  %263 = vmatpush.msra.mxu3 %v198_v18 }
  0x3e   :  { %273 = vmatpush.msrb.mxu0 %v224_v4 }
  0x3f   :  { %293 = vmatpush.msrb.mxu1 %v240_v5  ;;  %264 = vmatpush.msra.mxu3 %v197_v21 }
  0x40   :  { %274 = vmatpush.msrb.mxu0 %v223_v7 }
  0x41   :  { %294 = vmatpush.msrb.mxu1 %v239_v8 }
  0x42   :  { %275 = vmatpush.msrb.mxu0 %v222_v10 }
  0x43   :  { %295 = vmatpush.msrb.mxu1 %v238_v11 }
  0x44   :  { %276 = vmatpush.msrb.mxu0 %v221_v13 }
  0x45   :  { %296 = vmatpush.msrb.mxu1 %v237_v14 }
  0x46   :  { %277 = vmatpush.msrb.mxu0 %v220_v15 }
  0x47   :  { %297 = vmatpush.msrb.mxu1 %v236_v16 }
  0x48   :  { %278 = vmatpush.msrb.mxu0 %v219_v17 }
  0x49   :  { %298 = vmatpush.msrb.mxu1 %v235_v20 }
  0x4a   :  { %279 = vmatpush.msrb.mxu0 %v218_v19 }
  0x4b   :  { %299 = vmatpush.msrb.mxu1 %v234_v23 }
  0x4c   :  { %280 = vmatpush.msrb.mxu0 %v217_v22 }
  0x4d   :  { %300 = vmatpush.msrb.mxu1 %v233_v25 }
  0x4e   :  { %281 = vmatpush.msrb.mxu0 %v216_v24 }
  0x4f   :  { %301 = vmatpush.msrb.mxu1 %v232_v27 }
  0x50   :  { %282 = vmatpush.msrb.mxu0 %v215_v26 }
  0x51   :  { %302 = vmatpush.msrb.mxu1 %v231_v29 }
  0x52   :  { %283 = vmatpush.msrb.mxu0 %v214_v28 }
  0x53   :  { %303 = vmatpush.msrb.mxu1 %v230_v31 }
  0x54   :  { %284 = vmatpush.msrb.mxu0 %v213_v30 }
  0x55   :  { %304 = vmatpush.msrb.mxu1 %v229_v32 }
  0xb1   :  { %v154_v36 = vpop.f32.mrf.mxu0 }
  0xb2   :  { %v155_v37 = vadd.f32 %v154_v36, %v131_v34 }
  0xb3   :  { %v174_v38 = vpop.f32.mrf.mxu1 }
  0xb4   :  { %265 = vmatmul.f32.vlgmr.msra.gmra.mxu3 %v155_v37  ;;  %v175_v39 = vadd.f32 %v174_v38, %v132_v35 }
  0xb6   :  { %285 = vmatmul.f32.vlgmr.msrb.gmra.mxu0 %v175_v39 }
  0xb8   :  { %v194_v41 = vpop.f32.mrf.mxu2 }
  0xb9   :  { %v195_v42 = vadd.f32 %v194_v41, %v133_v40 }
  0xbb   :  { %305 = vmatmul.f32.vlgmr.msrb.gmra.mxu1 %v195_v42 }
 0x133   :  { %v286_v45 = vpop.f32.mrf.mxu0 }
 0x137   :  { %v266_v44 = vpop.f32.mrf.mxu3 }
 0x138   :  { %v267_v46 = vadd.f32 %v356_v43, %v266_v44  ;;  %v306_v47 = vpop.f32.mrf.mxu1 }
 0x13a   :  { %v287_v48 = vadd.f32 %v286_v45, %v267_v46 }
 0x13c   :  { %v307_v49 = vadd.f32 %v306_v47, %v287_v48 }
 0x13e   :  { %v309_v50 = vsub.f32 0.0, %v307_v49 }
 0x140   :  { %v310_v51 = vmul.f32 1.442695, %v309_v50 }
 0x142   :  { %357 = vpow2.f32 %v310_v51 }
 0x148   :  { %v358_v52 = vpop.eup %357 }
 0x149   :  { %v312_v53 = vadd.f32 1.0, %v358_v52 }
 0x14b   :  { %359 = vrcp.f32 %v312_v53  ;;  %v324_v57 = vand.u32 2147483648, %v312_v53  ;;  %v322_v59 = vand.u32 2147483647, %v312_v53  ;;  %vm318_vm1 = vweird.f32 %v312_v53 }
 0x14d   :  { %v325_v61 = vor.u32 1.1754944e-38, %v324_v57  ;;  %vm323_vm3 = vcmp.eq.f32.partialorder %v322_v59, 8.507059e+37 }
 0x151   :  { %v360_v54 = vpop.eup %359 }
 0x152   :  { %v314_v55 = vmul.f32 %v360_v54, %v312_v53  ;;  %vm319_vm0 = vweird.f32 %v360_v54 }
 0x153   :  { %vm320_vm2 = vmor %vm318_vm1, %vm319_vm0 }
 0x154   :  { %v315_v56 = vsub.f32 1.0, %v314_v55 }
 0x156   :  { %v316_v58 = vmul.f32 %v360_v54, %v315_v56 }
 0x158   :  { %v317_v60 = vadd.f32 %v360_v54, %v316_v58 }
 0x15a   :  { %v321_v62 = vsel %vm320_vm2, %v360_v54, %v317_v60 }
 0x15b   :  { %v326_v63 = vsel %vm323_vm3, %v325_v61, %v321_v62 }
 0x15c   :  { %327 = vst [vmem:[#allocation10] sm:$0xff] %v326_v63 }
 0x15d   :  { %338 = dma.vmem_to_hbm [thread:$0]  %s334_s15, 128, %s336_s18, [#allocation4]  }
 0x15e   :  { %487 = dma.done.wait [#allocation4], 128  }
 0x15f   :  { %488 = vsyncadd [#allocation4], 4294967168 }
 0x160   :  { %343 = vsyncpa [#allocation3], 1 }
 0x161   :  { %344 = vsyncpa [#allocation6], 1 }
 0x162   :  { %345 = vsyncpa [#allocation9], 1 }
 0x163   :  { %346 = vsyncpa [#allocation4], 1 }

</bundles_post_ra>
